<compile_context>
chip_gen: v5e
topology: v5e:2x2
jax: 0.10.0
libtpu: 0.0.40
codegen_flags: <defaults>
</compile_context>

<pallas_src>
import functools

import jax
import jax.numpy as jnp
from jax.experimental import pallas as pl
from jax.experimental.pallas import tpu as pltpu

LANE = 128
SUBLANE = 8


def _round_up(x: int, m: int) -> int:
    return ((x + m - 1) // m) * m


def _classifier_kernel(feat_ref, wt_ref, b_ref, out_ref):
    # feat_ref: (TB, Dp) bf16   wt_ref: (Dp, Cp) bf16 (whole array, resident)
    # b_ref:    (1, Cp)  f32    out_ref: (TB, Cp) f32
    logits = jnp.dot(
        feat_ref[...], wt_ref[...], preferred_element_type=jnp.float32
    )
    logits = logits + b_ref[...]                  # (1, Cp) broadcasts over rows
    # sigmoid(x) = 1 / (1 + exp(-x)); exp goes to the EUP, exact divide keeps
    # overflow safe: exp(-x) -> inf  =>  1/(1+inf) = 0 (no NaN).
    out_ref[...] = (1.0 / (1.0 + jnp.exp(-logits))).astype(out_ref.dtype)


def prepare_classifier_params(weight, bias, compute_dtype=jnp.bfloat16):
    """One-time (per model) parameter prep, hoisted out of the forward pass.

    weight: (C, D) PyTorch nn.Linear layout; bias: (C,).
    Returns wt_p: (Dp, Cp) compute_dtype (transposed + zero padded to lane
    multiples) and b_p: (1, Cp) f32.
    """
    C, D = weight.shape
    Dp = _round_up(D, LANE)
    Cp = _round_up(C, LANE)
    wt_p = (
        jnp.zeros((Dp, Cp), compute_dtype)
        .at[:D, :C]
        .set(weight.astype(compute_dtype).T)
    )
    b_p = jnp.zeros((1, Cp), jnp.float32).at[0, :C].set(bias.astype(jnp.float32))
    return wt_p, b_p


def _footprint_bytes(tb: int, Dp: int, Cp: int, in_isz: int, out_isz: int) -> int:
    return (
        2 * tb * Dp * in_isz      # double-buffered feat tiles
        + 2 * tb * Cp * out_isz   # double-buffered output tiles
        + Dp * Cp * in_isz        # weight: whole-array resident, single copy
        + Cp * 4                  # bias
    )


@functools.partial(jax.jit, static_argnames=("num_classes", "block_b"))
def image_classifier_forward(feat, wt_p, b_p, num_classes, *, block_b: int = 2048):
    """feat: (B, D); wt_p/b_p from prepare_classifier_params.

    Returns sigmoid(feat @ weight.T + bias) with shape (B, num_classes), f32.
    """
    B, D = feat.shape
    Dp, Cp = wt_p.shape
    compute_dtype = wt_p.dtype
    out_dtype = jnp.float32
    in_isz = jnp.dtype(compute_dtype).itemsize
    out_isz = jnp.dtype(out_dtype).itemsize

    # ---- static tile planning -------------------------------------------
    B8 = _round_up(B, SUBLANE)
    TB = min(_round_up(block_b, SUBLANE), B8)

    # Keep the pipelined working set well under the smallest per-core VMEM
    # (v7x: 64 MiB physical / 32 MiB scoped default; v5e scoped default 16 MiB
    # but we raise it explicitly below).
    VMEM_BUDGET = 24 * 1024 * 1024
    while TB > SUBLANE and _footprint_bytes(TB, Dp, Cp, in_isz, out_isz) > VMEM_BUDGET:
        TB = _round_up(TB // 2, SUBLANE)

    # If everything landed in a single block but the batch is big enough,
    # split into >=2 blocks so the "parallel" axis can shard across both
    # TensorCores on v7x (megacore).
    if pl.cdiv(B8, TB) == 1 and TB >= 2 * SUBLANE:
        TB = _round_up(pl.cdiv(TB, 2), SUBLANE)

    n_blocks = pl.cdiv(B8, TB)
    Bp = n_blocks * TB

    footprint = _footprint_bytes(TB, Dp, Cp, in_isz, out_isz)
    vmem_limit = int(min(48 * 1024 * 1024, max(2 * footprint, 16 * 1024 * 1024)))

    # ---- conditional pad / cast of activations (skip copy when aligned) --
    if B == Bp and D == Dp and feat.dtype == compute_dtype:
        feat_in = feat
    else:
        feat_in = (
            jnp.zeros((Bp, Dp), compute_dtype)
            .at[:B, :D]
            .set(feat.astype(compute_dtype))
        )

    out_p = pl.pallas_call(
        _classifier_kernel,
        out_shape=jax.ShapeDtypeStruct((Bp, Cp), out_dtype),
        grid_spec=pltpu.PrefetchScalarGridSpec(
            num_scalar_prefetch=0,
            grid=(n_blocks,),
            in_specs=[
                # Batch-tiled activations: double-buffered by the pipeliner.
                pl.BlockSpec((TB, Dp), lambda i: (i, 0)),
                # Invariant weight / bias: whole-array resident in VMEM,
                # single copy (no pointless double buffering).
                pl.BlockSpec(memory_space=pltpu.MemorySpace.VMEM),
                pl.BlockSpec(memory_space=pltpu.MemorySpace.VMEM),
            ],
            out_specs=pl.BlockSpec((TB, Cp), lambda i: (i, 0)),
        ),
        compiler_params=pltpu.CompilerParams(
            dimension_semantics=("parallel",),
            vmem_limit_bytes=vmem_limit,
        ),
        cost_estimate=pl.CostEstimate(
            flops=2 * Bp * Dp * Cp,
            transcendentals=2 * Bp * Cp,  # exp + reciprocal per output element
            bytes_accessed=(
                Bp * Dp * in_isz + Dp * Cp * in_isz + Cp * 4 + Bp * Cp * out_isz
            ),
        ),
    )(feat_in, wt_p, b_p)

    # Slice away batch / class padding only when padding was actually added.
    if B == Bp and num_classes == Cp:
        return out_p
    return out_p[:B, :num_classes]


if __name__ == "__main__":
    num_classes = 8
    feat_dim = 32
    batch = 2

    key = jax.random.PRNGKey(0)
    k_feat, k_w, k_b = jax.random.split(key, 3)

    # Deterministic synthetic parameters, shapes match nn.Linear(feat_dim, num_classes).
    bound = 1.0 / (feat_dim ** 0.5)
    weight = jax.random.uniform(
        k_w, (num_classes, feat_dim), jnp.float32, minval=-bound, maxval=bound
    )
    bias = jax.random.uniform(
        k_b, (num_classes,), jnp.float32, minval=-bound, maxval=bound
    )
    feat = jax.random.normal(k_feat, (batch, feat_dim), jnp.float32)

    # One-time parameter prep (transpose + pad + bf16 cast), outside forward.
    wt_p, b_p = prepare_classifier_params(weight, bias)

    out = image_classifier_forward(feat, wt_p, b_p, num_classes)
    out = jax.block_until_ready(out)

    # Reference check in plain JAX (bf16 MXU inputs -> modest tolerance).
    ref = jax.nn.sigmoid(feat @ weight.T + bias)
    assert out.shape == (batch, num_classes), out.shape
    assert jnp.allclose(out, ref, atol=2e-2, rtol=2e-2), float(
        jnp.max(jnp.abs(out - ref))
    )

    print("KERNEL_OK")
</pallas_src>

<mosaic_0001>
module attributes {stable_mosaic.version = 11 : i64} {
  func.func @_classifier_kernel(%arg0: i32, %arg1: memref<8x128xbf16, #tpu.memory_space<vmem>>, %arg2: memref<128x128xbf16, #tpu.memory_space<vmem>>, %arg3: memref<1x128xf32, #tpu.memory_space<vmem>>, %arg4: memref<8x128xf32, #tpu.memory_space<vmem>>) attributes {dimension_semantics = [#tpu.dimension_semantics<parallel>], iteration_bounds = array<i64: 1>, scalar_prefetch = 0 : i64, scratch_operands = 0 : i64, tpu.core_type = #tpu.core_type<tc>, window_params = [{transform_indices = @transform_0, window_bounds = array<i64: 8, 128>}, {pipeline_mode = #tpu.pipeline_mode<synchronous>, transform_indices = @transform_1, window_bounds = array<i64: 128, 128>}, {pipeline_mode = #tpu.pipeline_mode<synchronous>, transform_indices = @transform_2, window_bounds = array<i64: 1, 128>}, {transform_indices = @transform_3, window_bounds = array<i64: 8, 128>}]} {
    %c0 = arith.constant 0 : index
    %c0_0 = arith.constant 0 : index
    %0 = vector.load %arg1[%c0, %c0_0] : memref<8x128xbf16, #tpu.memory_space<vmem>>, vector<8x128xbf16>
    %c0_1 = arith.constant 0 : index
    %c0_2 = arith.constant 0 : index
    %1 = vector.load %arg2[%c0_1, %c0_2] : memref<128x128xbf16, #tpu.memory_space<vmem>>, vector<128x128xbf16>
    %cst = arith.constant dense<0.000000e+00> : vector<8x128xf32>
    %2 = tpu.matmul %0, %1, %cst {dimension_numbers = #tpu.dot_dimension_numbers<[1], [0], [0], [1], [0, 0, 1, 1], [], []>} : vector<8x128xbf16>, vector<128x128xbf16>, vector<8x128xf32> -> vector<8x128xf32>
    %c0_3 = arith.constant 0 : index
    %c0_4 = arith.constant 0 : index
    %3 = vector.load %arg3[%c0_3, %c0_4] : memref<1x128xf32, #tpu.memory_space<vmem>>, vector<1x128xf32>
    %4 = vector.broadcast %3 : vector<1x128xf32> to vector<8x128xf32>
    %5 = arith.addf %2, %4 : vector<8x128xf32>
    %cst_5 = arith.constant 0.000000e+00 : f32
    %6 = vector.broadcast %cst_5 : f32 to vector<8x128xf32>
    %7 = arith.subf %6, %5 : vector<8x128xf32>
    %8 = math.exp %7 : vector<8x128xf32>
    %cst_6 = arith.constant 1.000000e+00 : f32
    %9 = vector.broadcast %cst_6 : f32 to vector<8x128xf32>
    %10 = arith.addf %9, %8 : vector<8x128xf32>
    %cst_7 = arith.constant 1.000000e+00 : f32
    %11 = vector.broadcast %cst_7 : f32 to vector<8x128xf32>
    %12 = arith.divf %11, %10 : vector<8x128xf32>
    %c0_8 = arith.constant 0 : index
    %c0_9 = arith.constant 0 : index
    %13 = vector.load %arg4[%c0_8, %c0_9] : memref<8x128xf32, #tpu.memory_space<vmem>>, vector<8x128xf32>
    tpu.vector_store %arg4[%c0_8, %c0_9], %12 {strides = array<i32>} : memref<8x128xf32, #tpu.memory_space<vmem>>, vector<8x128xf32>,
    return
  }
  func.func @transform_0(%arg0: i32) -> (i32, i32) {
    %c0_i32 = arith.constant 0 : i32
    %c0_i32_0 = arith.constant 0 : i32
    return %arg0, %c0_i32 : i32, i32
  }
  func.func @transform_1(%arg0: i32) -> (i32, i32) {
    %c0_i32 = arith.constant 0 : i32
    %c0_i32_0 = arith.constant 0 : i32
    %c0_i32_1 = arith.constant 0 : i32
    return %c0_i32, %c0_i32_0 : i32, i32
  }
  func.func @transform_2(%arg0: i32) -> (i32, i32) {
    %c0_i32 = arith.constant 0 : i32
    %c0_i32_0 = arith.constant 0 : i32
    %c0_i32_1 = arith.constant 0 : i32
    return %c0_i32, %c0_i32_0 : i32, i32
  }
  func.func @transform_3(%arg0: i32) -> (i32, i32) {
    %c0_i32 = arith.constant 0 : i32
    %c0_i32_0 = arith.constant 0 : i32
    return %arg0, %c0_i32 : i32, i32
  }
}

</mosaic_0001>

<bundles_post_ra>
// kernel: image_classifier_forward.1
= control target key start
LH: loop header
LB: loop body
LE: loop exit
PB: predicated region body
PF: predicated region fallthrough
CT: control target
= control target key end

     0   :  { %8 = vsyncpa [#allocation3], 0  ;;  %s211_s15 = smov [#allocation2]   ;;  %s212_s17 = smov 64   ;;  %s246_s0 = inlined_call_operand.vmem [shape: bf16[8,128], index: 0, kind: input, shape index: {}]   ;;  %s247_s1 = inlined_call_operand.hbm [shape: bf16[128,128], index: 1, kind: input, shape index: {}]   ;;  %s248_s2 = inlined_call_operand.vmem [shape: f32[1,128], index: 2, kind: input, shape index: {}]   ;;  %s249_s3 = inlined_call_operand.vmem [shape: f32[8,128], index: 3, kind: output, shape index: {}]  }
   0x1   :  { %s15_s14 = sshll.u32 %s247_s1, 4  ;;  %s17_s16 = sshll.u32 %s211_s15, 4  ;;  %s16_s14 = int_to_ptr.hbm [resolvable:$true] %s15_s14  ;;  %s18_s16 = int_to_ptr.vmem [resolvable:$true] %s17_s16 }
   0x2   :  { %s213_s18 = smov 4  }
   0x3   :  { %23 = dma.hbm_to_vmem [thread:$0]  %s16_s14, 1024, %s18_s16, [#allocation3], %s212_s17, %s212_s17, %s213_s18  }
   0x4   :  { %209 = dma.done.wait [#allocation3], 1024  }
   0x5   :  { %210 = vsyncadd [#allocation3], 4294966272  ;;  %v176_v0 = vld [vmem:[#allocation2 + $0x38] sm:$0xff]  ;;  %v175_v1 = vld [vmem:[#allocation2 + $0x30] sm:$0xff] }
   0x6   :  { %99 = vmatpush.bf16.msra.mxu0 %v176_v0  ;;  %v174_v2 = vld [vmem:[#allocation2 + $0x28] sm:$0xff]  ;;  %v173_v3 = vld [vmem:[#allocation2 + $0x20] sm:$0xff]  ;;  %v172_v4 = vld [vmem:[#allocation2 + $0x18] sm:$0xff] }
   0x7   :  { %v171_v5 = vld [vmem:[#allocation2 + $0x10] sm:$0xff]  ;;  %v170_v6 = vld [vmem:[#allocation2 + $0x8] sm:$0xff]  ;;  %v169_v7 = vld [vmem:[#allocation2] sm:$0xff] }
   0x8   :  { %v30_v8 = vld [vmem:[%s246_s0] sm:$0xf] }
   0x9   :  { %v180_v9 = vld [vmem:[%s248_s2] ss:$0 sm:$0xff] }
   0xa   :  { %100 = vmatpush.bf16.msra.mxu0 %v175_v1 }
   0xe   :  { %101 = vmatpush.bf16.msra.mxu0 %v174_v2 }
  0x12   :  { %102 = vmatpush.bf16.msra.mxu0 %v173_v3 }
  0x16   :  { %103 = vmatpush.bf16.msra.mxu0 %v172_v4 }
  0x1a   :  { %104 = vmatpush.bf16.msra.mxu0 %v171_v5 }
  0x1e   :  { %105 = vmatpush.bf16.msra.mxu0 %v170_v6 }
  0x22   :  { %106 = vmatpush.bf16.msra.mxu0 %v169_v7 }
  0x25   :  { %107 = vmatmul.bf16.vlgmr.msra.gmra.mxu0 %v30_v8 }
  0xa2   :  { %v108_v10 = vpop.f32.mrf.mxu0 }
  0xa3   :  { %v109_v11 = vadd.f32 %v180_v9, %v108_v10 }
  0xa5   :  { %v112_v12 = vsub.f32 0.0, %v109_v11 }
  0xa7   :  { %v113_v13 = vmul.f32 1.442695, %v112_v12 }
  0xa9   :  { %181 = vpow2.f32 %v113_v13 }
  0xaa   :  { %v110_v14 = vpop.f32.mrf.mxu0 }
  0xaf   :  { %v182_v15 = vpop.eup %181 }
  0xb0   :  { %v115_v16 = vadd.f32 1.0, %v182_v15 }
  0xb2   :  { %183 = vrcp.f32 %v115_v16  ;;  %v127_v20 = vand.u32 2147483648, %v115_v16  ;;  %v125_v22 = vand.u32 2147483647, %v115_v16  ;;  %vm121_vm1 = vweird.f32 %v115_v16 }
  0xb4   :  { %v128_v24 = vor.u32 1.1754944e-38, %v127_v20  ;;  %vm126_vm3 = vcmp.eq.f32.partialorder %v125_v22, 8.507059e+37 }
  0xb8   :  { %v184_v17 = vpop.eup %183 }
  0xb9   :  { %v117_v18 = vmul.f32 %v184_v17, %v115_v16  ;;  %vm122_vm0 = vweird.f32 %v184_v17 }
  0xba   :  { %vm123_vm2 = vmor %vm121_vm1, %vm122_vm0 }
  0xbb   :  { %v118_v19 = vsub.f32 1.0, %v117_v18 }
  0xbd   :  { %v119_v21 = vmul.f32 %v184_v17, %v118_v19 }
  0xbf   :  { %v120_v23 = vadd.f32 %v184_v17, %v119_v21 }
  0xc1   :  { %v124_v25 = vsel %vm123_vm2, %v184_v17, %v120_v23 }
  0xc2   :  { %v129_v26 = vsel %vm126_vm3, %v128_v24, %v124_v25 }
  0xc3   :  { %131 = vst [vmem:[%s249_s3] sm:$0xff] %v129_v26 }
  0xc4   :  { %136 = vsyncpa [#allocation3], 1 }

</bundles_post_ra>
